<compile_context>
chip_gen: v7x
topology: tpu7x:2x2x1
jax: 0.10.0
libtpu: 0.0.40
codegen_flags: <defaults>
</compile_context>

<pallas_src>
import functools

import jax
import jax.numpy as jnp
from jax.experimental import pallas as pl
from jax.experimental.pallas import tpu as pltpu

LANE = 128


def _round_up(n, m):
    return ((n + m - 1) // m) * m


def _pad_to(a, shape):
    return jnp.pad(a, [(0, t - s) for s, t in zip(a.shape, shape)])


# ------------------------------ kernels -------------------------------------


def actor_fused_kernel(x_ref, gamma_ref, beta_ref,
                       w1_ref, b1_ref, w2_ref, b2_ref, w3_ref, b3_ref,
                       o_ref, *, true_b, eps):
    """Single-launch path: BN batch stats + fc1+relu + fc2+relu + out + tanh.

    x is read from HBM exactly once and stays VMEM-resident, so the batch
    statistics can use the numerically robust two-pass form.
    """
    x = x_ref[...]                                             # (Bp, Ps) f32
    inv_n = 1.0 / true_b

    # Padded rows are zero, so sum(x) over the padded slab is exact with
    # inv_n = 1/true_B.
    mean = jnp.sum(x, axis=0, keepdims=True) * inv_n
    # Mask padded rows out of the centered second moment.
    valid = jax.lax.broadcasted_iota(jnp.int32, x.shape, 0) < true_b
    d = jnp.where(valid, x - mean, 0.0)
    var = jnp.sum(d * d, axis=0, keepdims=True) * inv_n        # biased (training BN)

    scale = gamma_ref[...] * jax.lax.rsqrt(var + eps)          # BN folded to one FMA
    shift = beta_ref[...] - mean * scale
    xb = x * scale + shift                                     # f32 on VPU

    h1 = jnp.dot(xb.astype(jnp.bfloat16), w1_ref[...],
                 preferred_element_type=jnp.float32) + b1_ref[...]
    h1 = jnp.maximum(h1, 0.0)
    h2 = jnp.dot(h1.astype(jnp.bfloat16), w2_ref[...],
                 preferred_element_type=jnp.float32) + b2_ref[...]
    h2 = jnp.maximum(h2, 0.0)
    out = jnp.dot(h2.astype(jnp.bfloat16), w3_ref[...],
                  preferred_element_type=jnp.float32) + b3_ref[...]
    o_ref[...] = jnp.tanh(out)                                 # lane-dense f32 store


def bn_stats_kernel(x_ref, c_ref, gamma_ref, beta_ref,
                    scale_ref, shift_ref, s1_ref, s2_ref, *,
                    true_b, tile_b, eps):
    """Tiled-path pass 1: shifted/masked batch stats -> folded BN scale/shift.

    Accumulates sum(x - c) and sum((x - c)^2) (c = first batch row) in VMEM
    scratch across batch tiles; outputs written once at the final grid step.
    The grid axis is a reduction -> must stay "arbitrary".
    """
    i = pl.program_id(0)

    @pl.when(i == 0)
    def _():
        s1_ref[...] = jnp.zeros_like(s1_ref)
        s2_ref[...] = jnp.zeros_like(s2_ref)

    x = x_ref[...]                                             # (tile_b, Ps)
    rows = i * tile_b + jax.lax.broadcasted_iota(jnp.int32, x.shape, 0)
    d = jnp.where(rows < true_b, x - c_ref[...], 0.0)          # shifted + masked
    s1_ref[...] += jnp.sum(d, axis=0, keepdims=True)
    s2_ref[...] += jnp.sum(d * d, axis=0, keepdims=True)

    @pl.when(i == pl.num_programs(0) - 1)
    def _():
        inv_n = 1.0 / true_b
        m1 = s1_ref[...] * inv_n
        var = jnp.maximum(s2_ref[...] * inv_n - m1 * m1, 0.0)
        mean = c_ref[...] + m1
        s = gamma_ref[...] * jax.lax.rsqrt(var + eps)
        scale_ref[...] = s
        shift_ref[...] = beta_ref[...] - mean * s


def actor_mlp_kernel(x_ref, scale_ref, shift_ref,
                     w1_ref, b1_ref, w2_ref, b2_ref, w3_ref, b3_ref, o_ref):
    """Tiled-path pass 2 (per batch tile): BN FMA -> fc1+relu -> fc2+relu -> tanh."""
    xb = x_ref[...] * scale_ref[...] + shift_ref[...]

    h1 = jnp.dot(xb.astype(jnp.bfloat16), w1_ref[...],
                 preferred_element_type=jnp.float32) + b1_ref[...]
    h1 = jnp.maximum(h1, 0.0)
    h2 = jnp.dot(h1.astype(jnp.bfloat16), w2_ref[...],
                 preferred_element_type=jnp.float32) + b2_ref[...]
    h2 = jnp.maximum(h2, 0.0)
    out = jnp.dot(h2.astype(jnp.bfloat16), w3_ref[...],
                  preferred_element_type=jnp.float32) + b3_ref[...]
    o_ref[...] = jnp.tanh(out)


# ------------------------------ wrappers --------------------------------------


def _actor_forward_fused(x, packed, action_dim, *, eps):
    B = x.shape[0]
    Ps = packed["gamma"].shape[1]
    P1 = packed["w1"].shape[1]
    P2 = packed["w2"].shape[1]
    Pa = packed["w3"].shape[1]

    Bp = _round_up(B, 8)
    xp = _pad_to(x, (Bp, Ps))
    full = lambda i: (0, 0)

    out = pl.pallas_call(
        functools.partial(actor_fused_kernel, true_b=B, eps=eps),
        grid=(1,),
        in_specs=[pl.BlockSpec((Bp, Ps), full),
                  pl.BlockSpec((1, Ps), full),
                  pl.BlockSpec((1, Ps), full),
                  pl.BlockSpec((Ps, P1), full),
                  pl.BlockSpec((1, P1), full),
                  pl.BlockSpec((P1, P2), full),
                  pl.BlockSpec((1, P2), full),
                  pl.BlockSpec((P2, Pa), full),
                  pl.BlockSpec((1, Pa), full)],
        out_specs=pl.BlockSpec((Bp, Pa), full),
        out_shape=jax.ShapeDtypeStruct((Bp, Pa), jnp.float32),
        compiler_params=pltpu.CompilerParams(
            dimension_semantics=("arbitrary",),
            vmem_limit_bytes=32 * 1024 * 1024),
    )(xp, packed["gamma"], packed["beta"],
      packed["w1"], packed["b1"], packed["w2"], packed["b2"],
      packed["w3"], packed["b3"])

    return out[:B, :action_dim]


def _actor_forward_tiled(x, packed, action_dim, *, eps, max_tile_rows):
    B = x.shape[0]
    Ps = packed["gamma"].shape[1]
    P1 = packed["w1"].shape[1]
    P2 = packed["w2"].shape[1]
    Pa = packed["w3"].shape[1]

    # Pad the batch to a multiple of the tile instead of searching for an
    # exact divisor (no 8-row tiles, no single giant tile for prime B).
    tile_b = min(_round_up(max_tile_rows, 8), _round_up(B, 8))
    Bp = _round_up(B, tile_b)
    xp = _pad_to(x, (Bp, Ps))
    c = xp[:1, :]                       # per-feature offset for stable variance
    grid = (Bp // tile_b,)

    full = lambda i: (0, 0)
    row = lambda i: (i, 0)

    # Pass 1: folded BN (scale, shift) from shifted/masked batch statistics.
    scale, shift = pl.pallas_call(
        functools.partial(bn_stats_kernel, true_b=B, tile_b=tile_b, eps=eps),
        grid=grid,
        in_specs=[pl.BlockSpec((tile_b, Ps), row),
                  pl.BlockSpec((1, Ps), full),
                  pl.BlockSpec((1, Ps), full),
                  pl.BlockSpec((1, Ps), full)],
        out_specs=[pl.BlockSpec((1, Ps), full),
                   pl.BlockSpec((1, Ps), full)],
        out_shape=[jax.ShapeDtypeStruct((1, Ps), jnp.float32),
                   jax.ShapeDtypeStruct((1, Ps), jnp.float32)],
        scratch_shapes=[pltpu.VMEM((1, Ps), jnp.float32),
                        pltpu.VMEM((1, Ps), jnp.float32)],
        compiler_params=pltpu.CompilerParams(
            dimension_semantics=("arbitrary",)),   # batch reduction axis
    )(xp, c, packed["gamma"], packed["beta"])

    # Pass 2: fused MLP over independent batch tiles, weights VMEM-resident.
    out_padded = pl.pallas_call(
        actor_mlp_kernel,
        grid=grid,
        in_specs=[pl.BlockSpec((tile_b, Ps), row),
                  pl.BlockSpec((1, Ps), full),
                  pl.BlockSpec((1, Ps), full),
                  pl.BlockSpec((Ps, P1), full),
                  pl.BlockSpec((1, P1), full),
                  pl.BlockSpec((P1, P2), full),
                  pl.BlockSpec((1, P2), full),
                  pl.BlockSpec((P2, Pa), full),
                  pl.BlockSpec((1, Pa), full)],
        out_specs=pl.BlockSpec((tile_b, Pa), row),
        out_shape=jax.ShapeDtypeStruct((Bp, Pa), jnp.float32),
        compiler_params=pltpu.CompilerParams(
            dimension_semantics=("parallel",)),    # independent batch tiles
    )(xp, scale, shift,
      packed["w1"], packed["b1"], packed["w2"], packed["b2"],
      packed["w3"], packed["b3"])

    return out_padded[:B, :action_dim]


def actor_forward(state, packed, action_dim, *, eps=1e-5,
                  fused_max_rows=2048, max_tile_rows=1024):
    """Actor forward.  B <= fused_max_rows -> single fused launch (x read once);
    larger batches -> tiled two-pass path.  max_tile_rows=1024 is safe on all
    chips; 2048 is a good choice on v6e/v7x."""
    x = state.astype(jnp.float32)
    if x.shape[0] <= fused_max_rows:
        return _actor_forward_fused(x, packed, action_dim, eps=eps)
    return _actor_forward_tiled(x, packed, action_dim, eps=eps,
                                max_tile_rows=max_tile_rows)


# --------------------------- params / packing --------------------------------


def xavier_uniform(key, fan_in, fan_out):
    bound = (6.0 / (fan_in + fan_out)) ** 0.5
    # stored as (in, out) — already the transposed PyTorch weight
    return jax.random.uniform(key, (fan_in, fan_out), jnp.float32, -bound, bound)


def make_params(key, state_dim, fc1_units, fc2_units, action_dim):
    k1, k2, k3 = jax.random.split(key, 3)
    return {
        # BatchNorm1d defaults: weight (gamma) = 1, bias (beta) = 0
        "gamma": jnp.ones((state_dim,), jnp.float32),
        "beta": jnp.zeros((state_dim,), jnp.float32),
        # Linear layers: xavier_uniform weights, bias filled with 0.01
        "w1": xavier_uniform(k1, state_dim, fc1_units),
        "b1": jnp.full((fc1_units,), 0.01, jnp.float32),
        "w2": xavier_uniform(k2, fc1_units, fc2_units),
        "b2": jnp.full((fc2_units,), 0.01, jnp.float32),
        "w3": xavier_uniform(k3, fc2_units, action_dim),
        "b3": jnp.full((action_dim,), 0.01, jnp.float32),
    }


def pack_params(params):
    """Zero-pad feature dims to 128 lanes; weights -> bf16, biases/BN -> f32."""
    state_dim, fc1 = params["w1"].shape
    fc2 = params["w2"].shape[1]
    act = params["w3"].shape[1]
    Ps, P1, P2, Pa = (_round_up(d, LANE) for d in (state_dim, fc1, fc2, act))
    f32 = jnp.float32
    return {
        "gamma": _pad_to(params["gamma"].reshape(1, -1).astype(f32), (1, Ps)),
        "beta": _pad_to(params["beta"].reshape(1, -1).astype(f32), (1, Ps)),
        "w1": _pad_to(params["w1"], (Ps, P1)).astype(jnp.bfloat16),
        "b1": _pad_to(params["b1"].reshape(1, -1).astype(f32), (1, P1)),
        "w2": _pad_to(params["w2"], (P1, P2)).astype(jnp.bfloat16),
        "b2": _pad_to(params["b2"].reshape(1, -1).astype(f32), (1, P2)),
        "w3": _pad_to(params["w3"], (P2, Pa)).astype(jnp.bfloat16),
        "b3": _pad_to(params["b3"].reshape(1, -1).astype(f32), (1, Pa)),
    }


# ------------------------------ reference -----------------------------------


def actor_reference_f32(state, params, *, eps=1e-5):
    """Pure-f32 reference with the original module's semantics (training-mode BN)."""
    x = state.astype(jnp.float32)
    mean = jnp.mean(x, axis=0, keepdims=True)
    var = jnp.mean((x - mean) ** 2, axis=0, keepdims=True)
    x = (x - mean) * jax.lax.rsqrt(var + eps) * params["gamma"] + params["beta"]
    x = jnp.maximum(x @ params["w1"] + params["b1"], 0.0)
    x = jnp.maximum(x @ params["w2"] + params["b2"], 0.0)
    return jnp.tanh(x @ params["w3"] + params["b3"])


# ------------------------------ main ------------------------------------------

# TODO(synk): BatchNorm1d running_mean/running_var momentum updates are training
# side-state and do not affect this forward's output; they are not modeled here.

if __name__ == "__main__":
    state_dim = 16
    fc1_units = 32
    fc2_units = 32
    action_dim = 8

    key = jax.random.PRNGKey(0)
    k_state, k_params, k_state2 = jax.random.split(key, 3)

    params = make_params(k_params, state_dim, fc1_units, fc2_units, action_dim)
    packed = pack_params(params)

    # --- primary fused path (single launch, x read from HBM once) ---
    batch = 8
    state = jax.random.normal(k_state, (batch, state_dim), jnp.float32)
    fwd = jax.jit(functools.partial(actor_forward, action_dim=action_dim))
    out = jax.block_until_ready(fwd(state, packed))
    assert out.shape == (batch, action_dim)
    ref = actor_reference_f32(state, params)
    assert jnp.allclose(out, ref, atol=5e-2, rtol=0.0), \
        float(jnp.max(jnp.abs(out - ref)))

    # --- tiled fallback path (forced): ragged batch, padded to tile multiple ---
    batch2 = 40
    state2 = jax.random.normal(k_state2, (batch2, state_dim), jnp.float32)
    fwd_tiled = jax.jit(functools.partial(
        actor_forward, action_dim=action_dim, fused_max_rows=0, max_tile_rows=32))
    out2 = jax.block_until_ready(fwd_tiled(state2, packed))
    assert out2.shape == (batch2, action_dim)
    ref2 = actor_reference_f32(state2, params)
    assert jnp.allclose(out2, ref2, atol=5e-2, rtol=0.0), \
        float(jnp.max(jnp.abs(out2 - ref2)))

    print("KERNEL_OK")
</pallas_src>

<mosaic_0001>
module attributes {stable_mosaic.version = 11 : i64} {
  func.func @actor_fused_kernel(%arg0: i32, %arg1: memref<8x128xf32, #tpu.memory_space<vmem>>, %arg2: memref<1x128xf32, #tpu.memory_space<vmem>>, %arg3: memref<1x128xf32, #tpu.memory_space<vmem>>, %arg4: memref<128x128xbf16, #tpu.memory_space<vmem>>, %arg5: memref<1x128xf32, #tpu.memory_space<vmem>>, %arg6: memref<128x128xbf16, #tpu.memory_space<vmem>>, %arg7: memref<1x128xf32, #tpu.memory_space<vmem>>, %arg8: memref<128x128xbf16, #tpu.memory_space<vmem>>, %arg9: memref<1x128xf32, #tpu.memory_space<vmem>>, %arg10: memref<8x128xf32, #tpu.memory_space<vmem>>) attributes {dimension_semantics = [#tpu.dimension_semantics<arbitrary>], iteration_bounds = array<i64: 1>, scalar_prefetch = 0 : i64, scratch_operands = 0 : i64, tpu.core_type = #tpu.core_type<tc>, window_params = [{pipeline_mode = #tpu.pipeline_mode<synchronous>, transform_indices = @transform_0, window_bounds = array<i64: 8, 128>}, {pipeline_mode = #tpu.pipeline_mode<synchronous>, transform_indices = @transform_1, window_bounds = array<i64: 1, 128>}, {pipeline_mode = #tpu.pipeline_mode<synchronous>, transform_indices = @transform_2, window_bounds = array<i64: 1, 128>}, {pipeline_mode = #tpu.pipeline_mode<synchronous>, transform_indices = @transform_3, window_bounds = array<i64: 128, 128>}, {pipeline_mode = #tpu.pipeline_mode<synchronous>, transform_indices = @transform_4, window_bounds = array<i64: 1, 128>}, {pipeline_mode = #tpu.pipeline_mode<synchronous>, transform_indices = @transform_5, window_bounds = array<i64: 128, 128>}, {pipeline_mode = #tpu.pipeline_mode<synchronous>, transform_indices = @transform_6, window_bounds = array<i64: 1, 128>}, {pipeline_mode = #tpu.pipeline_mode<synchronous>, transform_indices = @transform_7, window_bounds = array<i64: 128, 128>}, {pipeline_mode = #tpu.pipeline_mode<synchronous>, transform_indices = @transform_8, window_bounds = array<i64: 1, 128>}, {pipeline_mode = #tpu.pipeline_mode<synchronous>, transform_indices = @transform_9, window_bounds = array<i64: 8, 128>}]} {
    %c0 = arith.constant 0 : index
    %c0_0 = arith.constant 0 : index
    %0 = vector.load %arg1[%c0, %c0_0] : memref<8x128xf32, #tpu.memory_space<vmem>>, vector<8x128xf32>
    %cst = arith.constant dense<0.000000e+00> : vector<128xf32>
    %1 = vector.multi_reduction <add>, %0, %cst [0] : vector<8x128xf32> to vector<128xf32>
    %2 = vector.shape_cast %1 : vector<128xf32> to vector<1x128xf32>
    %cst_1 = arith.constant 1.250000e-01 : f32
    %3 = vector.broadcast %cst_1 : f32 to vector<1x128xf32>
    %4 = arith.mulf %2, %3 : vector<1x128xf32>
    %5 = tpu.iota {dimensions = array<i32: 0>} : vector<8x128xi32>
    %c8_i32 = arith.constant 8 : i32
    %6 = vector.broadcast %c8_i32 : i32 to vector<8x128xi32>
    %7 = arith.cmpi slt, %5, %6 : vector<8x128xi32>
    %8 = vector.broadcast %4 : vector<1x128xf32> to vector<8x128xf32>
    %9 = arith.subf %0, %8 : vector<8x128xf32>
    %cst_2 = arith.constant 0.000000e+00 : f32
    %10 = vector.broadcast %cst_2 : f32 to vector<8x128xf32>
    %11 = arith.select %7, %9, %10 : vector<8x128xi1>, vector<8x128xf32>
    %12 = arith.mulf %11, %11 : vector<8x128xf32>
    %cst_3 = arith.constant dense<0.000000e+00> : vector<128xf32>
    %13 = vector.multi_reduction <add>, %12, %cst_3 [0] : vector<8x128xf32> to vector<128xf32>
    %14 = vector.shape_cast %13 : vector<128xf32> to vector<1x128xf32>
    %cst_4 = arith.constant 1.250000e-01 : f32
    %15 = vector.broadcast %cst_4 : f32 to vector<1x128xf32>
    %16 = arith.mulf %14, %15 : vector<1x128xf32>
    %c0_5 = arith.constant 0 : index
    %c0_6 = arith.constant 0 : index
    %17 = vector.load %arg2[%c0_5, %c0_6] : memref<1x128xf32, #tpu.memory_space<vmem>>, vector<1x128xf32>
    %cst_7 = arith.constant 9.99999974E-6 : f32
    %18 = vector.broadcast %cst_7 : f32 to vector<1x128xf32>
    %19 = arith.addf %16, %18 : vector<1x128xf32>
    %20 = math.rsqrt %19 : vector<1x128xf32>
    %21 = arith.mulf %17, %20 : vector<1x128xf32>
    %c0_8 = arith.constant 0 : index
    %c0_9 = arith.constant 0 : index
    %22 = vector.load %arg3[%c0_8, %c0_9] : memref<1x128xf32, #tpu.memory_space<vmem>>, vector<1x128xf32>
    %23 = arith.mulf %4, %21 : vector<1x128xf32>
    %24 = arith.subf %22, %23 : vector<1x128xf32>
    %25 = vector.broadcast %21 : vector<1x128xf32> to vector<8x128xf32>
    %26 = arith.mulf %0, %25 : vector<8x128xf32>
    %27 = vector.broadcast %24 : vector<1x128xf32> to vector<8x128xf32>
    %28 = arith.addf %26, %27 : vector<8x128xf32>
    %29 = arith.truncf %28 : vector<8x128xf32> to vector<8x128xbf16>
    %c0_10 = arith.constant 0 : index
    %c0_11 = arith.constant 0 : index
    %30 = vector.load %arg4[%c0_10, %c0_11] : memref<128x128xbf16, #tpu.memory_space<vmem>>, vector<128x128xbf16>
    %cst_12 = arith.constant dense<0.000000e+00> : vector<8x128xf32>
    %31 = tpu.matmul %29, %30, %cst_12 {dimension_numbers = #tpu.dot_dimension_numbers<[1], [0], [0], [1], [0, 0, 1, 1], [], []>} : vector<8x128xbf16>, vector<128x128xbf16>, vector<8x128xf32> -> vector<8x128xf32>
    %c0_13 = arith.constant 0 : index
    %c0_14 = arith.constant 0 : index
    %32 = vector.load %arg5[%c0_13, %c0_14] : memref<1x128xf32, #tpu.memory_space<vmem>>, vector<1x128xf32>
    %33 = vector.broadcast %32 : vector<1x128xf32> to vector<8x128xf32>
    %34 = arith.addf %31, %33 : vector<8x128xf32>
    %cst_15 = arith.constant 0.000000e+00 : f32
    %35 = vector.broadcast %cst_15 : f32 to vector<8x128xf32>
    %36 = arith.maximumf %34, %35 : vector<8x128xf32>
    %37 = arith.truncf %36 : vector<8x128xf32> to vector<8x128xbf16>
    %c0_16 = arith.constant 0 : index
    %c0_17 = arith.constant 0 : index
    %38 = vector.load %arg6[%c0_16, %c0_17] : memref<128x128xbf16, #tpu.memory_space<vmem>>, vector<128x128xbf16>
    %cst_18 = arith.constant dense<0.000000e+00> : vector<8x128xf32>
    %39 = tpu.matmul %37, %38, %cst_18 {dimension_numbers = #tpu.dot_dimension_numbers<[1], [0], [0], [1], [0, 0, 1, 1], [], []>} : vector<8x128xbf16>, vector<128x128xbf16>, vector<8x128xf32> -> vector<8x128xf32>
    %c0_19 = arith.constant 0 : index
    %c0_20 = arith.constant 0 : index
    %40 = vector.load %arg7[%c0_19, %c0_20] : memref<1x128xf32, #tpu.memory_space<vmem>>, vector<1x128xf32>
    %41 = vector.broadcast %40 : vector<1x128xf32> to vector<8x128xf32>
    %42 = arith.addf %39, %41 : vector<8x128xf32>
    %cst_21 = arith.constant 0.000000e+00 : f32
    %43 = vector.broadcast %cst_21 : f32 to vector<8x128xf32>
    %44 = arith.maximumf %42, %43 : vector<8x128xf32>
    %45 = arith.truncf %44 : vector<8x128xf32> to vector<8x128xbf16>
    %c0_22 = arith.constant 0 : index
    %c0_23 = arith.constant 0 : index
    %46 = vector.load %arg8[%c0_22, %c0_23] : memref<128x128xbf16, #tpu.memory_space<vmem>>, vector<128x128xbf16>
    %cst_24 = arith.constant dense<0.000000e+00> : vector<8x128xf32>
    %47 = tpu.matmul %45, %46, %cst_24 {dimension_numbers = #tpu.dot_dimension_numbers<[1], [0], [0], [1], [0, 0, 1, 1], [], []>} : vector<8x128xbf16>, vector<128x128xbf16>, vector<8x128xf32> -> vector<8x128xf32>
    %c0_25 = arith.constant 0 : index
    %c0_26 = arith.constant 0 : index
    %48 = vector.load %arg9[%c0_25, %c0_26] : memref<1x128xf32, #tpu.memory_space<vmem>>, vector<1x128xf32>
    %49 = vector.broadcast %48 : vector<1x128xf32> to vector<8x128xf32>
    %50 = arith.addf %47, %49 : vector<8x128xf32>
    %51 = math.tanh %50 : vector<8x128xf32>
    %c0_27 = arith.constant 0 : index
    %c0_28 = arith.constant 0 : index
    %52 = vector.load %arg10[%c0_27, %c0_28] : memref<8x128xf32, #tpu.memory_space<vmem>>, vector<8x128xf32>
    tpu.vector_store %arg10[%c0_27, %c0_28], %51 {strides = array<i32>} : memref<8x128xf32, #tpu.memory_space<vmem>>, vector<8x128xf32>,
    return
  }
  func.func @transform_0(%arg0: i32) -> (i32, i32) {
    %c0_i32 = arith.constant 0 : i32
    %c0_i32_0 = arith.constant 0 : i32
    %c0_i32_1 = arith.constant 0 : i32
    return %c0_i32, %c0_i32_0 : i32, i32
  }
  func.func @transform_1(%arg0: i32) -> (i32, i32) {
    %c0_i32 = arith.constant 0 : i32
    %c0_i32_0 = arith.constant 0 : i32
    %c0_i32_1 = arith.constant 0 : i32
    return %c0_i32, %c0_i32_0 : i32, i32
  }
  func.func @transform_2(%arg0: i32) -> (i32, i32) {
    %c0_i32 = arith.constant 0 : i32
    %c0_i32_0 = arith.constant 0 : i32
    %c0_i32_1 = arith.constant 0 : i32
    return %c0_i32, %c0_i32_0 : i32, i32
  }
  func.func @transform_3(%arg0: i32) -> (i32, i32) {
    %c0_i32 = arith.constant 0 : i32
    %c0_i32_0 = arith.constant 0 : i32
    %c0_i32_1 = arith.constant 0 : i32
    return %c0_i32, %c0_i32_0 : i32, i32
  }
  func.func @transform_4(%arg0: i32) -> (i32, i32) {
    %c0_i32 = arith.constant 0 : i32
    %c0_i32_0 = arith.constant 0 : i32
    %c0_i32_1 = arith.constant 0 : i32
    return %c0_i32, %c0_i32_0 : i32, i32
  }
  func.func @transform_5(%arg0: i32) -> (i32, i32) {
    %c0_i32 = arith.constant 0 : i32
    %c0_i32_0 = arith.constant 0 : i32
    %c0_i32_1 = arith.constant 0 : i32
    return %c0_i32, %c0_i32_0 : i32, i32
  }
  func.func @transform_6(%arg0: i32) -> (i32, i32) {
    %c0_i32 = arith.constant 0 : i32
    %c0_i32_0 = arith.constant 0 : i32
    %c0_i32_1 = arith.constant 0 : i32
    return %c0_i32, %c0_i32_0 : i32, i32
  }
  func.func @transform_7(%arg0: i32) -> (i32, i32) {
    %c0_i32 = arith.constant 0 : i32
    %c0_i32_0 = arith.constant 0 : i32
    %c0_i32_1 = arith.constant 0 : i32
    return %c0_i32, %c0_i32_0 : i32, i32
  }
  func.func @transform_8(%arg0: i32) -> (i32, i32) {
    %c0_i32 = arith.constant 0 : i32
    %c0_i32_0 = arith.constant 0 : i32
    %c0_i32_1 = arith.constant 0 : i32
    return %c0_i32, %c0_i32_0 : i32, i32
  }
  func.func @transform_9(%arg0: i32) -> (i32, i32) {
    %c0_i32 = arith.constant 0 : i32
    %c0_i32_0 = arith.constant 0 : i32
    %c0_i32_1 = arith.constant 0 : i32
    return %c0_i32, %c0_i32_0 : i32, i32
  }
}

</mosaic_0001>

<bundles_post_ra>
// kernel: actor_forward.1
= control target key start
LH: loop header
LB: loop body
LE: loop exit
PB: predicated region body
PF: predicated region fallthrough
CT: control target
= control target key end

     0   :  { %14 = vsyncpa [#allocation3], 0  ;;  %s893_s0 = inlined_call_operand.vmem [shape: f32[8,128], index: 0, kind: input, shape index: {}]   ;;  %s894_s1 = inlined_call_operand.vmem [shape: f32[1,128], index: 1, kind: input, shape index: {}]   ;;  %s895_s2 = inlined_call_operand.vmem [shape: f32[1,128], index: 2, kind: input, shape index: {}]   ;;  %s896_s3 = inlined_call_operand.hbm [shape: bf16[128,128], index: 3, kind: input, shape index: {}]   ;;  %s897_s4 = inlined_call_operand.vmem [shape: f32[1,128], index: 4, kind: input, shape index: {}]   ;;  %s898_s5 = inlined_call_operand.hbm [shape: bf16[128,128], index: 5, kind: input, shape index: {}]   ;;  %s899_s6 = inlined_call_operand.vmem [shape: f32[1,128], index: 6, kind: input, shape index: {}]   ;;  %s900_s7 = inlined_call_operand.hbm [shape: bf16[128,128], index: 7, kind: input, shape index: {}]   ;;  %s901_s8 = inlined_call_operand.vmem [shape: f32[1,128], index: 8, kind: input, shape index: {}]   ;;  %s902_s9 = inlined_call_operand.hbm [shape: f32[8,128], index: 9, kind: output, shape index: {}]  }
   0x1   :  { %15 = vsyncpa [#allocation6], 0 }
   0x2   :  { %16 = vsyncpa [#allocation4], 0  ;;  %s717_s30 = smov [#allocation5]   ;;  %s718_s11 = smov [#allocation2]  }
   0x3   :  { %s42_s10 = sshll.u32 %s717_s30, 4  ;;  %s28_s12 = sshll.u32 %s718_s11, 4  ;;  %s43_s10 = int_to_ptr.vmem [resolvable:$true] %s42_s10  ;;  %s775_s12 = int_to_ptr.vmem [resolvable:$true] %s28_s12 }
   0x4   :  { %s623_s15 = scalar_lea.hbm %s898_s5, 1024 }
   0x5   :  { %p624_p0 = scmp.ne.s32.totalorder %s898_s5, %s623_s15  ;;  %p627_p1 = scmp.lt.u32.totalorder %s623_s15, %s898_s5 }
   0x7   :  { %p629_p2 = pnand %p627_p1, %p624_p0 }
   0x9   :  { %632 = shalt.err (!%p629_p2)
}
   0xa   :  { %s633_s20 = scalar_lea.vmem %s43_s10, 1024  ;;  %p638_p4 = scmp.lt.s32.totalorder %s43_s10, %s43_s10 }
   0xb   :  { %p634_p3 = scmp.ne.s32.totalorder %s43_s10, %s633_s20  ;;  %p639_p5 = scmp.lt.s32.totalorder %s633_s20, %s633_s20 }
   0xd   :  { %p640_p6 = por %p639_p5, %p638_p4 }
   0xf   :  { %p641_p7 = pnand %p640_p6, %p634_p3 }
  0x11   :  { %644 = shalt.err (!%p641_p7)
}
  0x12   :  { %s719_s21 = smov 64   ;;  %s720_s22 = smov 4  }
  0x13   :  { %48 = dma.hbm_to_vmem [thread:$0]  %s898_s5, 1024, %s43_s10, [#allocation6], %s719_s21, %s719_s21, %s720_s22  }
  0x14   :  { %s645_s27 = scalar_lea.hbm %s896_s3, 1024 }
  0x15   :  { %p646_p8 = scmp.ne.s32.totalorder %s896_s3, %s645_s27  ;;  %p649_p9 = scmp.lt.u32.totalorder %s645_s27, %s896_s3 }
  0x17   :  { %p651_p10 = pnand %p649_p9, %p646_p8 }
  0x19   :  { %654 = shalt.err (!%p651_p10)
}
  0x1a   :  { %s655_s13 = scalar_lea.vmem %s775_s12, 1024  ;;  %p660_p12 = scmp.lt.s32.totalorder %s775_s12, %s775_s12 }
  0x1b   :  { %p656_p11 = scmp.ne.s32.totalorder %s775_s12, %s655_s13  ;;  %p661_p13 = scmp.lt.s32.totalorder %s655_s13, %s655_s13 }
  0x1d   :  { %p662_p0 = por %p661_p13, %p660_p12 }
  0x1f   :  { %p663_p1 = pnand %p662_p0, %p656_p11 }
  0x21   :  { %666 = shalt.err (!%p663_p1)
}
  0x22   :  { %34 = dma.hbm_to_vmem [thread:$0]  %s896_s3, 1024, %s775_s12, [#allocation3], %s719_s21, %s719_s21, %s720_s22  }
  0x23   :  { %s721_s14 = smov [#allocation7]   ;;  %s667_s18 = scalar_lea.hbm %s900_s7, 1024 }
  0x24   :  { %s56_s15 = sshll.u32 %s721_s14, 4  ;;  %p668_p2 = scmp.ne.s32.totalorder %s900_s7, %s667_s18  ;;  %s57_s15 = int_to_ptr.vmem [resolvable:$true] %s56_s15 }
  0x25   :  { %p671_p3 = scmp.lt.u32.totalorder %s667_s18, %s900_s7 }
  0x27   :  { %p673_p4 = pnand %p671_p3, %p668_p2 }
  0x29   :  { %676 = shalt.err (!%p673_p4)
}
  0x2a   :  { %s677_s25 = scalar_lea.vmem %s57_s15, 1024  ;;  %p682_p6 = scmp.lt.s32.totalorder %s57_s15, %s57_s15 }
  0x2b   :  { %p678_p5 = scmp.ne.s32.totalorder %s57_s15, %s677_s25  ;;  %p683_p7 = scmp.lt.s32.totalorder %s677_s25, %s677_s25 }
  0x2d   :  { %p684_p8 = por %p683_p7, %p682_p6 }
  0x2f   :  { %p685_p9 = pnand %p684_p8, %p678_p5 }
  0x31   :  { %688 = shalt.err (!%p685_p9)
}
  0x32   :  { %62 = dma.hbm_to_vmem [thread:$0]  %s900_s7, 1024, %s57_s15, [#allocation6], %s719_s21, %s719_s21, %s720_s22  }
  0x33   :  { %711 = dma.done.wait [#allocation3], 1024  }
  0x34   :  { %712 = vsyncadd [#allocation3], 4294966272 }
  0x35   :  { %713 = dma.done.wait [#allocation6], 2048  }
  0x36   :  { %714 = vsyncadd [#allocation6], 4294965248  ;;  %v722_v0 = vmov 0.0   ;;  %vm723_vm0 = vmmov 0   ;;  %v595_v1 = vld [vmem:[#allocation2] sm:$0xff]   ;;  %v596_v2 = vld [vmem:[#allocation2 + $0x8] sm:$0xff]   ;;  %v104_v33 = vlaneseq }
  0x37   :  { %527 = vmatprep.subr.bf16.mxu0 %v722_v0  ;;  %543 = vmatprep.mubr.msk.bf16.mxu0 %vm723_vm0, %v722_v0  ;;  %v597_v3 = vld [vmem:[#allocation2 + $0x10] sm:$0xff]   ;;  %v838_v4 = vld [vmem:[%s893_s0] sm:$0xff]  ;;  %v598_v7 = vld [vmem:[#allocation2 + $0x18] sm:$0xff]   ;;  %s724_s11 = smov [#allocation8]  }
  0x38   :  { %547 = vmatprep.subr.bf16.mxu1 %v722_v0  ;;  %563 = vmatprep.mubr.msk.bf16.mxu1 %vm723_vm0, %v722_v0  ;;  %v76_v5 = vrot.slane %v838_v4, 4  ;;  %v603_v6 = vld [vmem:[#allocation5] sm:$0xff]   ;;  %v604_v9 = vld [vmem:[#allocation5 + $0x8] sm:$0xff]   ;;  %v605_v13 = vld [vmem:[#allocation5 + $0x10] sm:$0xff]   ;;  %v105_v34 = vshrl.u32 %v104_v33, 7 }
  0x39   :  { %528 = vmatpush3.bf16.msra.mxu0 %v595_v1  ;;  %548 = vmatpush3.bf16.msra.mxu1 %v603_v6  ;;  %v599_v11 = vld [vmem:[#allocation2 + $0x20] sm:$0xff]   ;;  %v600_v14 = vld [vmem:[#allocation2 + $0x28] sm:$0xff]   ;;  %v606_v16 = vld [vmem:[#allocation5 + $0x18] sm:$0xff]  }
  0x3a   :  { %529 = vmatprep.subr.bf16.mxu0 %v722_v0  ;;  %v77_v8 = vadd.f32 %v76_v5, %v838_v4  ;;  %549 = vmatprep.subr.bf16.mxu1 %v722_v0  ;;  %v601_v19 = vld [vmem:[#allocation2 + $0x30] sm:$0xff]   ;;  %v607_v21 = vld [vmem:[#allocation5 + $0x20] sm:$0xff]   ;;  %v602_v23 = vld [vmem:[#allocation2 + $0x38] sm:$0xff]   ;;  %v106_v36 = vsub.s32 0, %v105_v34 }
  0x3b   :  { %v608_v25 = vld [vmem:[#allocation5 + $0x28] sm:$0xff]   ;;  %v96_v35 = vld [vmem:[%s894_s1] sm:$0x1]  ;;  %v609_v47 = vld [vmem:[#allocation5 + $0x30] sm:$0xff]  }
  0x3c   :  { %v78_v10 = vrot.slane %v77_v8, 2  ;;  %v100_v39 = vld [vmem:[%s895_s2] sm:$0x1]  ;;  %v610_v48 = vld [vmem:[#allocation5 + $0x38] sm:$0xff]   ;;  %v612_v50 = vld [vmem:[#allocation7 + $0x8] sm:$0xff]  }
  0x3d   :  { %530 = vmatpush3.bf16.msra.mxu0 %v596_v2  ;;  %550 = vmatpush3.bf16.msra.mxu1 %v604_v9  ;;  %v611_v49 = vld [vmem:[#allocation7] sm:$0xff]   ;;  %v613_v51 = vld [vmem:[#allocation7 + $0x10] sm:$0xff]   ;;  %v614_v52 = vld [vmem:[#allocation7 + $0x18] sm:$0xff]  }
  0x3e   :  { %531 = vmatprep.subr.bf16.mxu0 %v722_v0  ;;  %v79_v12 = vadd.f32 %v78_v10, %v77_v8  ;;  %551 = vmatprep.subr.bf16.mxu1 %v722_v0  ;;  %v615_v53 = vld [vmem:[#allocation7 + $0x20] sm:$0xff]   ;;  %v616_v54 = vld [vmem:[#allocation7 + $0x28] sm:$0xff]   ;;  %v617_v63 = vld [vmem:[#allocation7 + $0x30] sm:$0xff]  }
  0x3f   :  { %v473_v55 = vld [vmem:[%s897_s4] ss:$0 sm:$0xff]  ;;  %v618_v1 = vld [vmem:[#allocation7 + $0x38] sm:$0xff]  }
  0x40   :  { %v80_v15 = vrot.slane %v79_v12, 1  ;;  %v482_v2 = vld [vmem:[%s899_s6] ss:$0 sm:$0xff]  ;;  %s463_s6 = sshll.u32 %s724_s11, 4  ;;  %s464_s6 = int_to_ptr.vmem [resolvable:$true] %s463_s6 }
  0x41   :  { %532 = vmatpush3.bf16.msra.mxu0 %v597_v3  ;;  %552 = vmatpush3.bf16.msra.mxu1 %v605_v13  ;;  %v491_v10 = vld [vmem:[%s901_s8] ss:$0 sm:$0xff]  ;;  %s689_s13 = scalar_lea.vmem %s464_s6, 128  ;;  %p694_p11 = scmp.lt.s32.totalorder %s464_s6, %s464_s6 }
  0x42   :  { %533 = vmatprep.subr.bf16.mxu0 %v722_v0  ;;  %v81_v17 = vadd.f32 %v80_v15, %v79_v12  ;;  %553 = vmatprep.subr.bf16.mxu1 %v722_v0  ;;  %p690_p10 = scmp.ne.s32.totalorder %s464_s6, %s689_s13  ;;  %p695_p12 = scmp.lt.s32.totalorder %s689_s13, %s689_s13 }
  0x44   :  { %v82_v18 = vmul.f32 0.125, %v81_v17  ;;  %p696_p13 = por %p695_p12, %p694_p11 }
  0x45   :  { %534 = vmatpush3.bf16.msra.mxu0 %v598_v7  ;;  %554 = vmatpush3.bf16.msra.mxu1 %v606_v16 }
  0x46   :  { %535 = vmatprep.subr.bf16.mxu0 %v722_v0  ;;  %v86_v20 = vsub.f32 %v838_v4, %v82_v18  ;;  %555 = vmatprep.subr.bf16.mxu1 %v722_v0  ;;  %p697_p0 = pnand %p696_p13, %p690_p10 }
  0x48   :  { %v88_v22 = vmul.f32 %v86_v20, %v86_v20 }
  0x49   :  { %536 = vmatpush3.bf16.msra.mxu0 %v599_v11  ;;  %556 = vmatpush3.bf16.msra.mxu1 %v607_v21 }
  0x4a   :  { %537 = vmatprep.subr.bf16.mxu0 %v722_v0  ;;  %v89_v24 = vrot.slane %v88_v22, 4  ;;  %557 = vmatprep.subr.bf16.mxu1 %v722_v0 }
  0x4c   :  { %v90_v26 = vadd.f32 %v89_v24, %v88_v22 }
  0x4d   :  { %538 = vmatpush3.bf16.msra.mxu0 %v600_v14  ;;  %558 = vmatpush3.bf16.msra.mxu1 %v608_v25 }
  0x4e   :  { %539 = vmatprep.subr.bf16.mxu0 %v722_v0  ;;  %v91_v27 = vrot.slane %v90_v26, 2  ;;  %559 = vmatprep.subr.bf16.mxu1 %v722_v0 }
  0x50   :  { %v92_v28 = vadd.f32 %v91_v27, %v90_v26 }
  0x51   :  { %540 = vmatpush3.bf16.msra.mxu0 %v601_v19  ;;  %560 = vmatpush3.bf16.msra.mxu1 %v609_v47 }
  0x52   :  { %541 = vmatprep.subr.bf16.mxu0 %v722_v0  ;;  %v93_v29 = vrot.slane %v92_v28, 1  ;;  %561 = vmatprep.subr.bf16.mxu1 %v722_v0 }
  0x54   :  { %v94_v30 = vadd.f32 %v93_v29, %v92_v28 }
  0x55   :  { %542 = vmatpush3.bf16.msra.mxu0 %v602_v23  ;;  %562 = vmatpush3.bf16.msra.mxu1 %v610_v48 }
  0x56   :  { %567 = vmatprep.subr.bf16.mxu0 %v722_v0  ;;  %v95_v31 = vmul.f32 0.125, %v94_v30 }
  0x58   :  { %v97_v32 = vadd.f32 1e-05, %v95_v31 }
  0x5a   :  { %619 = vrsqrt.f32 %v97_v32 }
  0x64   :  { %v620_v37 = vpop.eup %619 }
  0x65   :  { %v99_v38 = vmul.f32 %v620_v37, %v96_v35 }
  0x67   :  { %v101_v40 = vmul.f32 %v99_v38, %v82_v18  ;;  %v107_v41 = vrot.slane %v99_v38, %v106_v36 }
  0x69   :  { %v102_v42 = vsub.f32 %v100_v39, %v101_v40  ;;  %v109_v43 = vmul.f32 %v107_v41, %v838_v4 }
  0x6b   :  { %v114_v44 = vrot.slane %v102_v42, %v106_v36 }
  0x6d   :  { %v116_v45 = vadd.f32 %v114_v44, %v109_v43 }
  0x6f   :  { %v117_v46 = vpack.c.bf16 %v116_v45, %v116_v45 }
  0x71   :  { %544 = vmatmul.mubr.bf16.vlgmr.msra.gmra.mrb[0].mxu0 %v117_v46 }
  0x72   :  { %583 = vmatprep.mubr.msk.bf16.mxu0 %vm723_vm0, %v722_v0  ;;  %568 = vmatpush3.bf16.msra.mxu0 %v611_v49 }
  0x73   :  { %569 = vmatprep.subr.bf16.mxu0 %v722_v0 }
  0x76   :  { %570 = vmatpush3.bf16.msra.mxu0 %v612_v50 }
  0x77   :  { %571 = vmatprep.subr.bf16.mxu0 %v722_v0 }
  0x7a   :  { %572 = vmatpush3.bf16.msra.mxu0 %v613_v51 }
  0x7b   :  { %573 = vmatprep.subr.bf16.mxu0 %v722_v0 }
  0x7e   :  { %574 = vmatpush3.bf16.msra.mxu0 %v614_v52 }
  0x7f   :  { %575 = vmatprep.subr.bf16.mxu0 %v722_v0 }
  0x82   :  { %576 = vmatpush3.bf16.msra.mxu0 %v615_v53 }
  0x83   :  { %577 = vmatprep.subr.bf16.mxu0 %v722_v0 }
  0x86   :  { %578 = vmatpush3.bf16.msra.mxu0 %v616_v54 }
  0x87   :  { %579 = vmatprep.subr.bf16.mxu0 %v722_v0 }
  0x8a   :  { %580 = vmatpush3.bf16.msra.mxu0 %v617_v63 }
  0x8b   :  { %581 = vmatprep.subr.bf16.mxu0 %v722_v0 }
  0x8e   :  { %582 = vmatpush3.bf16.msra.mxu0 %v618_v1 }
 0x144   :  { %v223_v56 = vpop.f32.mrb[0].mxu0 }
 0x145   :  { %v224_v57 = vadd.f32 %v473_v55, %v223_v56  ;;  %v545_v58 = vpop.f32.mrb[1].mxu0 }
 0x146   :  { %v226_v59 = vpop.f32.mrb[2].mxu0 }
 0x147   :  { %v229_v60 = vmax.f32 %v224_v57, 0.0  ;;  %v546_v61 = vpop.f32.mrb[3].mxu0 }
 0x149   :  { %v230_v62 = vpack.c.bf16 %v229_v60, %v229_v60 }
 0x14b   :  { %564 = vmatmul.mubr.bf16.vlgmr.msra.gmra.mrb[0].mxu1 %v230_v62 }
 0x21e   :  { %v336_v3 = vpop.f32.mrb[0].mxu1 }
 0x21f   :  { %v337_v4 = vadd.f32 %v482_v2, %v336_v3  ;;  %v565_v5 = vpop.f32.mrb[1].mxu1 }
 0x220   :  { %v339_v6 = vpop.f32.mrb[2].mxu1 }
 0x221   :  { %v342_v7 = vmax.f32 %v337_v4, 0.0  ;;  %v566_v8 = vpop.f32.mrb[3].mxu1 }
 0x223   :  { %v343_v9 = vpack.c.bf16 %v342_v7, %v342_v7 }
 0x225   :  { %584 = vmatmul.mubr.bf16.vlgmr.msra.gmra.mrb[4].mxu0 %v343_v9 }
 0x2f8   :  { %v449_v11 = vpop.f32.mrb[4].mxu0 }
 0x2f9   :  { %v450_v0 = vadd.f32 %v491_v10, %v449_v11  ;;  %v585_v12 = vpop.f32.mrb[5].mxu0 }
 0x2fa   :  { %v452_v13 = vpop.f32.mrb[6].mxu0 }
 0x2fb   :  { %621 = vtanh.f32 %v450_v0  ;;  %v586_v14 = vpop.f32.mrb[7].mxu0 }
 0x305   :  { %v622_v15 = vpop.eup %621 }
 0x306   :  { %456 = vst [vmem:[#allocation8] sm:$0xff] %v622_v15 }
 0x307   :  { %700 = shalt.err (!%p697_p0)
}
 0x308   :  { %s701_s10 = scalar_lea.hbm %s902_s9, 128 }
 0x309   :  { %p702_p1 = scmp.ne.s32.totalorder %s902_s9, %s701_s10  ;;  %p705_p2 = scmp.lt.u32.totalorder %s701_s10, %s902_s9 }
 0x30b   :  { %p707_p3 = pnand %p705_p2, %p702_p1 }
 0x30d   :  { %710 = shalt.err (!%p707_p3)
}
 0x30e   :  { %466 = dma.vmem_to_hbm [thread:$0]  %s464_s6, 128, %s902_s9, [#allocation4]  }
 0x30f   :  { %715 = dma.done.wait [#allocation4], 128  }
 0x310   :  { %716 = vsyncadd [#allocation4], 4294967168 }
 0x311   :  { %470 = vsyncpa [#allocation3], 1 }
 0x312   :  { %471 = vsyncpa [#allocation6], 1 }
 0x313   :  { %472 = vsyncpa [#allocation4], 1 }

</bundles_post_ra>
